<compile_context>
chip_gen: v7x
topology: tpu7x:2x2x1
jax: 0.10.0
libtpu: 0.0.40
codegen_flags: <defaults>
</compile_context>

<pallas_src>
import functools

import numpy as np
import jax
import jax.numpy as jnp
from jax import lax
from jax.experimental import pallas as pl
from jax.experimental.pallas import tpu as pltpu


def _shoot_infs(x):
    """JAX equivalent of torch shoot_infs on a small vector: zero the infs, take the
    max of the remaining entries, write that max back into the inf positions."""
    mask = jnp.isinf(x)
    xz = jnp.where(mask, jnp.zeros_like(x), x)
    m = jnp.max(xz)
    return jnp.where(mask, m, xz)


def _sk_kernel(logits_ref, r_ref, out_ref, *, inv_epsilon, num_iters):
    x = logits_ref[...].astype(jnp.float32)
    B, K = x.shape

    # ---- forward() prologue ----
    q = x * inv_epsilon
    q = q - jnp.max(q)            # global max
    P = jnp.exp(q)                # == Q.t() in the torch code, shape (B, K); all <= 1

    # ---- iterate(Q): Q /= sum(Q) ----
    # Two-stage global sum; 1/total is folded into the first column step below.
    rowsum0 = jnp.sum(P, axis=1, keepdims=True)       # (B, 1)
    inv_total = 1.0 / jnp.sum(rowsum0)                # scalar

    r_row = r_ref[...].astype(jnp.float32)            # (1, K)  target marginal r
    inv_B = jnp.float32(1.0 / B)                      # c = ones(B)/B

    def col_step(P, inv_scale=None):
        # torch: u = r / Q.sum(1); u = shoot_infs(u); Q *= u.unsqueeze(1)
        colsum = jnp.sum(P, axis=0, keepdims=True)    # (1, K)
        if inv_scale is not None:                     # account for folded 1/total
            colsum = colsum * inv_scale
        u = _shoot_infs(r_row / colsum)               # small (1,K) divide
        if inv_scale is not None:
            u = u * inv_scale
        return P * u

    def row_step(P):
        # torch: Q *= (c / Q.sum(0)).unsqueeze(0)
        rowsum = jnp.sum(P, axis=1, keepdims=True)    # (B, 1)
        return P * (inv_B / rowsum)                   # small (B,1) divide

    if num_iters > 0:
        # First iteration's column step carries the folded global normalization.
        P = col_step(P, inv_total)
        if num_iters >= 2:
            def one_iter(P):
                return col_step(row_step(P))
            if num_iters <= 5:
                for _ in range(num_iters - 1):        # small: fully unrolled
                    P = one_iter(P)
            else:
                P = lax.fori_loop(0, num_iters - 1, lambda i, p: one_iter(p), P,
                                  unroll=2)
        # Last row step is cancelled exactly by the final per-row normalization: skip.

    # (Q / Q.sum(0, keepdim=True)).t().float() -- reciprocal on (B,1), then multiply.
    rowsum = jnp.sum(P, axis=1, keepdims=True)
    out_ref[...] = (P * (1.0 / rowsum)).astype(out_ref.dtype)


def _compute_r_row(logits_f32, *, inv_epsilon, imb_factor, B, K):
    """Wrapper-side computation of the target marginal r (shape (1, K), lane-dense).

    For imb_factor > 1 this replicates:
        r[argsort(Q.sum(1))] = sort(r);  r = clamp(r, min=1);  r /= r.sum()
    (argsort of the column sums is invariant to the global normalization, so it is
    computed directly from exp(logits/eps - max)).
    """
    if imb_factor <= 1:
        return jnp.full((1, K), 1.0 / K, dtype=jnp.float32)

    # Geometric marginal, ascending-sorted, static (numpy, trace-time).
    r_geo = (1.0 / imb_factor) ** (np.arange(K) / (K - 1.0)) * (float(B) / float(K))
    r_sorted = np.sort(r_geo).astype(np.float32)

    q = logits_f32 * inv_epsilon
    q = q - jnp.max(q)
    colsum = jnp.sum(jnp.exp(q), axis=0)              # == Q.sum(1) up to a global scale
    order = jnp.argsort(colsum)                       # distinct positions, even on ties
    r_new = jnp.zeros((K,), jnp.float32).at[order].set(jnp.asarray(r_sorted))
    r_new = jnp.maximum(r_new, 1.0)
    r_new = r_new / jnp.sum(r_new)
    return r_new.reshape(1, K)


def sinkhorn_knopp(logits, *, num_iters=3, epsilon=0.05, imb_factor=1.0):
    """Pallas implementation of SinkhornKnopp.forward (returns shape (B, K) float32).

    NOTE: the logits buffer is donated (output aliases input); do not reuse the
    passed-in array afterwards.
    """
    logits = jnp.asarray(logits, jnp.float32)
    B, K = logits.shape
    inv_epsilon = float(1.0 / float(epsilon))

    r_row = _compute_r_row(logits, inv_epsilon=inv_epsilon,
                           imb_factor=float(imb_factor), B=B, K=K)

    kernel = functools.partial(_sk_kernel, inv_epsilon=inv_epsilon,
                               num_iters=int(num_iters))

    io_bytes = 4 * (B * K + K)                       # aliased (B,K) block + (1,K) r
    vmem_limit = int(min(max(3 * io_bytes, 32 << 20), 64 << 20))  # safe on v5e/v6e/v7x

    cost = pl.CostEstimate(
        flops=int((4 * num_iters + 6) * B * K),
        transcendentals=int(B * K),
        bytes_accessed=int(8 * B * K),
    )

    return pl.pallas_call(
        kernel,
        out_shape=jax.ShapeDtypeStruct((B, K), jnp.float32),
        in_specs=[
            pl.BlockSpec(memory_space=pltpu.MemorySpace.VMEM),
            pl.BlockSpec(memory_space=pltpu.MemorySpace.VMEM),
        ],
        out_specs=pl.BlockSpec(memory_space=pltpu.MemorySpace.VMEM),
        input_output_aliases={0: 0},
        compiler_params=pltpu.CompilerParams(vmem_limit_bytes=vmem_limit),
        cost_estimate=cost,
    )(logits, r_row)
    # TODO(synk): for B*K beyond single-block VMEM (esp. v7x 64 MiB), add a B-tiled /
    # HBM-streamed variant that keeps only the (1,K)/(B,1) scale vectors resident.


def _reference_forward(logits, num_iters, epsilon, imb_factor):
    """Pure-numpy reference replicating the PyTorch module (for sanity checking)."""
    q = np.asarray(logits, np.float64) / epsilon
    q = q - q.max()
    Q = np.exp(q).T                     # (K, B)
    Q = Q / Q.sum()
    Kc, Bc = Q.shape
    c = np.ones(Bc) / Bc
    if imb_factor > 1:
        r = (1.0 / imb_factor) ** (np.arange(Kc) / (Kc - 1.0)) * (Bc / Kc)
        order = np.argsort(Q.sum(1))
        r_new = np.empty_like(r)
        r_new[order] = np.sort(r)
        r = np.clip(r_new, 1.0, None)
        r = r / r.sum()
    else:
        r = np.ones(Kc) / Kc
    for _ in range(num_iters):
        u = Q.sum(1)
        u = r / u
        mask = np.isinf(u)
        if mask.any():
            u[mask] = 0.0
            u[mask] = u.max()
        Q *= u[:, None]
        Q *= (c / Q.sum(0))[None, :]
    return (Q / Q.sum(0, keepdims=True)).T


if __name__ == "__main__":
    key = jax.random.PRNGKey(0)
    num_iters, epsilon = 3, 0.05

    # --- balanced case: batch=8, num prototypes/classes=32 ---
    B, K = 8, 32
    logits = jax.random.normal(key, (B, K), dtype=jnp.float32)
    logits_np = np.asarray(logits)                    # copy BEFORE donation
    out = sinkhorn_knopp(logits, num_iters=num_iters, epsilon=epsilon, imb_factor=1.0)
    out = jax.block_until_ready(out)
    ref = _reference_forward(logits_np, num_iters, epsilon, 1.0)
    assert out.shape == (B, K)
    assert np.isfinite(np.asarray(out)).all()
    np.testing.assert_allclose(np.asarray(out), ref, rtol=1e-3, atol=1e-5)

    # --- imbalanced case (exercises the wrapper-side rank/marginal path) ---
    B2, K2, imb = 64, 16, 10.0
    logits2 = jax.random.normal(jax.random.PRNGKey(1), (B2, K2), dtype=jnp.float32)
    logits2_np = np.asarray(logits2)                  # copy BEFORE donation
    out2 = sinkhorn_knopp(logits2, num_iters=num_iters, epsilon=epsilon, imb_factor=imb)
    out2 = jax.block_until_ready(out2)
    ref2 = _reference_forward(logits2_np, num_iters, epsilon, imb)
    assert out2.shape == (B2, K2)
    assert np.isfinite(np.asarray(out2)).all()
    np.testing.assert_allclose(np.asarray(out2), ref2, rtol=1e-3, atol=1e-5)

    # --- single-iteration edge case (exercises the fused last-step path) ---
    out3 = sinkhorn_knopp(jnp.asarray(logits_np), num_iters=1, epsilon=epsilon,
                          imb_factor=1.0)
    out3 = jax.block_until_ready(out3)
    ref3 = _reference_forward(logits_np, 1, epsilon, 1.0)
    np.testing.assert_allclose(np.asarray(out3), ref3, rtol=1e-3, atol=1e-5)

    print("KERNEL_OK")
</pallas_src>

<mosaic_0001>
module attributes {stable_mosaic.version = 11 : i64} {
  func.func @_sk_kernel(%arg0: memref<8x32xf32, #tpu.memory_space<vmem>>, %arg1: memref<1x32xf32, #tpu.memory_space<vmem>>, %arg2: memref<8x32xf32, #tpu.memory_space<vmem>>) attributes {dimension_semantics = [], scalar_prefetch = 0 : i64, scratch_operands = 0 : i64, tpu.core_type = #tpu.core_type<tc>} {
    %c0 = arith.constant 0 : index
    %c0_0 = arith.constant 0 : index
    %0 = vector.load %arg0[%c0, %c0_0] : memref<8x32xf32, #tpu.memory_space<vmem>>, vector<8x32xf32>
    %cst = arith.constant 2.000000e+01 : f32
    %1 = vector.broadcast %cst : f32 to vector<8x32xf32>
    %2 = arith.mulf %0, %1 : vector<8x32xf32>
    %3 = vector.shape_cast %2 : vector<8x32xf32> to vector<1x8x32xf32>
    %cst_1 = arith.constant dense<0xFF800000> : vector<1xf32>
    %4 = vector.multi_reduction <maximumf>, %3, %cst_1 [1, 2] : vector<1x8x32xf32> to vector<1xf32>
    %5 = vector.shape_cast %4 : vector<1xf32> to vector<1x1x1xf32>
    %6 = vector.extract %5[0, 0, 0] : f32 from vector<1x1x1xf32>
    %7 = vector.broadcast %6 : f32 to vector<8x32xf32>
    %8 = arith.subf %2, %7 : vector<8x32xf32>
    %9 = math.exp %8 : vector<8x32xf32>
    %cst_2 = arith.constant dense<0.000000e+00> : vector<8xf32>
    %10 = vector.multi_reduction <add>, %9, %cst_2 [1] : vector<8x32xf32> to vector<8xf32>
    %11 = vector.shape_cast %10 : vector<8xf32> to vector<8x1xf32>
    %12 = vector.shape_cast %11 : vector<8x1xf32> to vector<1x8x1xf32>
    %cst_3 = arith.constant dense<0.000000e+00> : vector<1xf32>
    %13 = vector.multi_reduction <add>, %12, %cst_3 [1, 2] : vector<1x8x1xf32> to vector<1xf32>
    %14 = vector.shape_cast %13 : vector<1xf32> to vector<1x1x1xf32>
    %15 = vector.extract %14[0, 0, 0] : f32 from vector<1x1x1xf32>
    %cst_4 = arith.constant 1.000000e+00 : f32
    %16 = arith.divf %cst_4, %15 : f32
    %c0_5 = arith.constant 0 : index
    %c0_6 = arith.constant 0 : index
    %17 = vector.load %arg1[%c0_5, %c0_6] : memref<1x32xf32, #tpu.memory_space<vmem>>, vector<1x32xf32>
    %cst_7 = arith.constant dense<0.000000e+00> : vector<32xf32>
    %18 = vector.multi_reduction <add>, %9, %cst_7 [0] : vector<8x32xf32> to vector<32xf32>
    %19 = vector.shape_cast %18 : vector<32xf32> to vector<1x32xf32>
    %20 = vector.broadcast %16 : f32 to vector<1x32xf32>
    %21 = arith.mulf %19, %20 : vector<1x32xf32>
    %22 = arith.divf %17, %21 : vector<1x32xf32>
    %23 = math.absf %22 : vector<1x32xf32>
    %cst_8 = arith.constant 0x7F800000 : f32
    %24 = vector.broadcast %cst_8 : f32 to vector<1x32xf32>
    %25 = arith.cmpf oeq, %23, %24 : vector<1x32xf32>
    %cst_9 = arith.constant 0.000000e+00 : f32
    %26 = vector.broadcast %cst_9 : f32 to vector<1x32xf32>
    %27 = arith.select %25, %26, %22 : vector<1x32xi1>, vector<1x32xf32>
    %28 = vector.shape_cast %27 : vector<1x32xf32> to vector<1x1x32xf32>
    %cst_10 = arith.constant dense<0xFF800000> : vector<1xf32>
    %29 = vector.multi_reduction <maximumf>, %28, %cst_10 [1, 2] : vector<1x1x32xf32> to vector<1xf32>
    %30 = vector.shape_cast %29 : vector<1xf32> to vector<1x1x1xf32>
    %31 = vector.extract %30[0, 0, 0] : f32 from vector<1x1x1xf32>
    %32 = vector.broadcast %31 : f32 to vector<1x32xf32>
    %33 = arith.select %25, %32, %27 : vector<1x32xi1>, vector<1x32xf32>
    %34 = vector.broadcast %16 : f32 to vector<1x32xf32>
    %35 = arith.mulf %33, %34 : vector<1x32xf32>
    %36 = vector.broadcast %35 : vector<1x32xf32> to vector<8x32xf32>
    %37 = arith.mulf %9, %36 : vector<8x32xf32>
    %cst_11 = arith.constant dense<0.000000e+00> : vector<8xf32>
    %38 = vector.multi_reduction <add>, %37, %cst_11 [1] : vector<8x32xf32> to vector<8xf32>
    %39 = vector.shape_cast %38 : vector<8xf32> to vector<8x1xf32>
    %cst_12 = arith.constant 1.250000e-01 : f32
    %40 = vector.broadcast %cst_12 : f32 to vector<8x1xf32>
    %41 = arith.divf %40, %39 : vector<8x1xf32>
    %42 = vector.broadcast %41 : vector<8x1xf32> to vector<8x32xf32>
    %43 = arith.mulf %37, %42 : vector<8x32xf32>
    %cst_13 = arith.constant dense<0.000000e+00> : vector<32xf32>
    %44 = vector.multi_reduction <add>, %43, %cst_13 [0] : vector<8x32xf32> to vector<32xf32>
    %45 = vector.shape_cast %44 : vector<32xf32> to vector<1x32xf32>
    %46 = arith.divf %17, %45 : vector<1x32xf32>
    %47 = math.absf %46 : vector<1x32xf32>
    %cst_14 = arith.constant 0x7F800000 : f32
    %48 = vector.broadcast %cst_14 : f32 to vector<1x32xf32>
    %49 = arith.cmpf oeq, %47, %48 : vector<1x32xf32>
    %cst_15 = arith.constant 0.000000e+00 : f32
    %50 = vector.broadcast %cst_15 : f32 to vector<1x32xf32>
    %51 = arith.select %49, %50, %46 : vector<1x32xi1>, vector<1x32xf32>
    %52 = vector.shape_cast %51 : vector<1x32xf32> to vector<1x1x32xf32>
    %cst_16 = arith.constant dense<0xFF800000> : vector<1xf32>
    %53 = vector.multi_reduction <maximumf>, %52, %cst_16 [1, 2] : vector<1x1x32xf32> to vector<1xf32>
    %54 = vector.shape_cast %53 : vector<1xf32> to vector<1x1x1xf32>
    %55 = vector.extract %54[0, 0, 0] : f32 from vector<1x1x1xf32>
    %56 = vector.broadcast %55 : f32 to vector<1x32xf32>
    %57 = arith.select %49, %56, %51 : vector<1x32xi1>, vector<1x32xf32>
    %58 = vector.broadcast %57 : vector<1x32xf32> to vector<8x32xf32>
    %59 = arith.mulf %43, %58 : vector<8x32xf32>
    %cst_17 = arith.constant dense<0.000000e+00> : vector<8xf32>
    %60 = vector.multi_reduction <add>, %59, %cst_17 [1] : vector<8x32xf32> to vector<8xf32>
    %61 = vector.shape_cast %60 : vector<8xf32> to vector<8x1xf32>
    %cst_18 = arith.constant 1.250000e-01 : f32
    %62 = vector.broadcast %cst_18 : f32 to vector<8x1xf32>
    %63 = arith.divf %62, %61 : vector<8x1xf32>
    %64 = vector.broadcast %63 : vector<8x1xf32> to vector<8x32xf32>
    %65 = arith.mulf %59, %64 : vector<8x32xf32>
    %cst_19 = arith.constant dense<0.000000e+00> : vector<32xf32>
    %66 = vector.multi_reduction <add>, %65, %cst_19 [0] : vector<8x32xf32> to vector<32xf32>
    %67 = vector.shape_cast %66 : vector<32xf32> to vector<1x32xf32>
    %68 = arith.divf %17, %67 : vector<1x32xf32>
    %69 = math.absf %68 : vector<1x32xf32>
    %cst_20 = arith.constant 0x7F800000 : f32
    %70 = vector.broadcast %cst_20 : f32 to vector<1x32xf32>
    %71 = arith.cmpf oeq, %69, %70 : vector<1x32xf32>
    %cst_21 = arith.constant 0.000000e+00 : f32
    %72 = vector.broadcast %cst_21 : f32 to vector<1x32xf32>
    %73 = arith.select %71, %72, %68 : vector<1x32xi1>, vector<1x32xf32>
    %74 = vector.shape_cast %73 : vector<1x32xf32> to vector<1x1x32xf32>
    %cst_22 = arith.constant dense<0xFF800000> : vector<1xf32>
    %75 = vector.multi_reduction <maximumf>, %74, %cst_22 [1, 2] : vector<1x1x32xf32> to vector<1xf32>
    %76 = vector.shape_cast %75 : vector<1xf32> to vector<1x1x1xf32>
    %77 = vector.extract %76[0, 0, 0] : f32 from vector<1x1x1xf32>
    %78 = vector.broadcast %77 : f32 to vector<1x32xf32>
    %79 = arith.select %71, %78, %73 : vector<1x32xi1>, vector<1x32xf32>
    %80 = vector.broadcast %79 : vector<1x32xf32> to vector<8x32xf32>
    %81 = arith.mulf %65, %80 : vector<8x32xf32>
    %cst_23 = arith.constant dense<0.000000e+00> : vector<8xf32>
    %82 = vector.multi_reduction <add>, %81, %cst_23 [1] : vector<8x32xf32> to vector<8xf32>
    %83 = vector.shape_cast %82 : vector<8xf32> to vector<8x1xf32>
    %cst_24 = arith.constant 1.000000e+00 : f32
    %84 = vector.broadcast %cst_24 : f32 to vector<8x1xf32>
    %85 = arith.divf %84, %83 : vector<8x1xf32>
    %86 = vector.broadcast %85 : vector<8x1xf32> to vector<8x32xf32>
    %87 = arith.mulf %81, %86 : vector<8x32xf32>
    %c0_25 = arith.constant 0 : index
    %c0_26 = arith.constant 0 : index
    %88 = vector.load %arg2[%c0_25, %c0_26] : memref<8x32xf32, #tpu.memory_space<vmem>>, vector<8x32xf32>
    tpu.vector_store %arg2[%c0_25, %c0_26], %87 {strides = array<i32>} : memref<8x32xf32, #tpu.memory_space<vmem>>, vector<8x32xf32>,
    return
  }
}

</mosaic_0001>

<bundles_post_ra>
// kernel: tpu_custom_call.1
= control target key start
LH: loop header
LB: loop body
LE: loop exit
PB: predicated region body
PF: predicated region fallthrough
CT: control target
= control target key end

     0   :  { %7 = vsyncpa [#allocation3], 0  ;;  %s340_s0 = inlined_call_operand.hbm [shape: f32[8,32], index: 0, kind: input, shape index: {}, may-alias: {0,2}]   ;;  %s341_s1 = inlined_call_operand.vmem [shape: f32[1,32], index: 1, kind: input, shape index: {}]   ;;  %s342_s2 = inlined_call_operand.hbm [shape: f32[8,32], index: 2, kind: output, shape index: {}, may-alias: {0,2}]  }
   0x1   :  { %8 = vsyncpa [#allocation4], 0  ;;  %s267_s9 = smov [#allocation2]   ;;  %s219_s13 = scalar_lea.hbm %s340_s0, 128 }
   0x2   :  { %s15_s10 = sshll.u32 %s267_s9, 4  ;;  %p220_p0 = scmp.ne.s32.totalorder %s340_s0, %s219_s13  ;;  %s16_s10 = int_to_ptr.vmem [resolvable:$true] %s15_s10 }
   0x3   :  { %p223_p1 = scmp.lt.u32.totalorder %s219_s13, %s340_s0 }
   0x5   :  { %p225_p2 = pnand %p223_p1, %p220_p0 }
   0x7   :  { %228 = shalt.err (!%p225_p2)
}
   0x8   :  { %s229_s18 = scalar_lea.vmem %s16_s10, 128  ;;  %p234_p4 = scmp.lt.s32.totalorder %s16_s10, %s16_s10 }
   0x9   :  { %p230_p3 = scmp.ne.s32.totalorder %s16_s10, %s229_s18  ;;  %p235_p5 = scmp.lt.s32.totalorder %s229_s18, %s229_s18 }
   0xb   :  { %p236_p6 = por %p235_p5, %p234_p4 }
   0xd   :  { %p237_p7 = pnand %p236_p6, %p230_p3 }
   0xf   :  { %240 = shalt.err (!%p237_p7)
}
  0x10   :  { %18 = dma.hbm_to_vmem [thread:$0]  %s340_s0, 128, %s16_s10, [#allocation3]  }
  0x11   :  { %263 = dma.done.wait [#allocation3], 128  }
  0x12   :  { %264 = vsyncadd [#allocation3], 4294967168  ;;  %v24_v0 = vld [vmem:[#allocation2] sm:$0xff]  ;;  %vm26_vm0 = vcmask 261120   ;;  %vm44_vm1 = vcmask 7168   ;;  %vm72_vm2 = vcmask 253952   ;;  %v87_v48 = vlaneseq }
  0x13   :  { %v25_v1 = vmul.f32 20.0, %v24_v0  ;;  %v301_v34 = vld [vmem:[%s341_s1] sm:$0x1]  ;;  %s268_s27 = smov [#allocation5]  }
  0x14   :  { %v88_v49 = vshrl.u32 %v87_v48, 7  ;;  %s180_s28 = sshll.u32 %s268_s27, 4  ;;  %s181_s28 = int_to_ptr.vmem [resolvable:$true] %s180_s28 }
  0x15   :  { %v27_v2 = vsel %vm26_vm0, %v25_v1, -inf  ;;  %s241_s29 = scalar_lea.vmem %s181_s28, 128  ;;  %p246_p9 = scmp.lt.s32.totalorder %s181_s28, %s181_s28 }
  0x16   :  { %28 = vmax.xlane.f32.xlu0 %v27_v2  ;;  %v311_v51 = vsub.s32 0, %v88_v49  ;;  %p242_p8 = scmp.ne.s32.totalorder %s181_s28, %s241_s29  ;;  %p247_p10 = scmp.lt.s32.totalorder %s241_s29, %s241_s29 }
  0x18   :  { %p248_p11 = por %p247_p10, %p246_p9 }
  0x1a   :  { %p249_p12 = pnand %p248_p11, %p242_p8 }
  0xa3   :  { %v29_v3 = vpop.xlane.xlu0 %28 }
  0xa4   :  { %v30_v4 = vrot.slane %v29_v3, 4 }
  0xa6   :  { %v31_v5 = vmax.f32 %v29_v3, %v30_v4 }
  0xa8   :  { %v32_v6 = vrot.slane %v31_v5, 2 }
  0xaa   :  { %v33_v7 = vmax.f32 %v31_v5, %v32_v6 }
  0xac   :  { %v34_v8 = vrot.slane %v33_v7, 1 }
  0xae   :  { %v35_v9 = vmax.f32 %v33_v7, %v34_v8 }
  0xb0   :  { %189 = vpush %v35_v9 }
  0xe1   :  { %s190_s21 = spop %189 }
  0xe2   :  { %v37_v10 = vstv %s190_s21 }
  0xe3   :  { %v38_v11 = vsub.f32 %v25_v1, %v37_v10 }
  0xe5   :  { %v39_v12 = vmul.f32 1.442695, %v38_v11 }
  0xe7   :  { %203 = vpow2.f32 %v39_v12 }
  0xf1   :  { %v204_v13 = vpop.eup %203 }
  0xf2   :  { %v41_v14 = vsel %vm26_vm0, %v204_v13, 0.0 }
  0xf3   :  { %42 = vadd.xlane.f32.xlu0 %v41_v14  ;;  %v59_v26 = vrot.slane %v41_v14, 4 }
  0xf5   :  { %v60_v27 = vadd.f32 %v59_v26, %v41_v14 }
  0xf7   :  { %v61_v28 = vrot.slane %v60_v27, 2 }
  0xf9   :  { %v62_v29 = vadd.f32 %v61_v28, %v60_v27 }
  0xfb   :  { %v63_v30 = vrot.slane %v62_v29, 1 }
  0xfd   :  { %v64_v31 = vadd.f32 %v63_v30, %v62_v29 }
 0x180   :  { %v43_v15 = vpop.xlane.xlu0 %42 }
 0x181   :  { %v45_v16 = vsel %vm44_vm1, %v43_v15, 0.0 }
 0x182   :  { %46 = vadd.xlane.f32.xlu1 %v45_v16 }
 0x20f   :  { %v47_v17 = vpop.xlane.xlu1 %46 }
 0x210   :  { %v48_v18 = vrot.slane %v47_v17, 4 }
 0x212   :  { %v49_v19 = vadd.f32 %v48_v18, %v47_v17 }
 0x214   :  { %v50_v20 = vrot.slane %v49_v19, 2 }
 0x216   :  { %v51_v21 = vadd.f32 %v50_v20, %v49_v19 }
 0x218   :  { %v52_v22 = vrot.slane %v51_v21, 1 }
 0x21a   :  { %v53_v23 = vadd.f32 %v52_v22, %v51_v21 }
 0x21c   :  { %191 = vpush %v53_v23 }
 0x24d   :  { %s192_s0 = spop %191 }
 0x24e   :  { %v55_v24 = vstv %s192_s0 }
 0x24f   :  { %205 = vrcp.f32 %v55_v24 }
 0x259   :  { %v206_v25 = vpop.eup %205 }
 0x25a   :  { %193 = vpush %v206_v25 }
 0x28b   :  { %s194_s22 = spop %193 }
 0x28c   :  { %v65_v32 = vstv %s194_s22 }
 0x28d   :  { %v66_v33 = vmul.f32 %v65_v32, %v64_v31 }
 0x28f   :  { %207 = vrcp.f32 %v66_v33 }
 0x299   :  { %v208_v35 = vpop.eup %207 }
 0x29a   :  { %v68_v36 = vmul.f32 %v208_v35, %v301_v34 }
 0x29c   :  { %v69_v37 = vand.u32 2147483647, %v68_v36 }
 0x29e   :  { %vm304_vm3 = vcmp.eq.f32.partialorder %v69_v37, inf }
 0x29f   :  { %v71_v39 = vsel %vm304_vm3, 0.0, %v68_v36 }
 0x2a0   :  { %v73_v40 = vsel %vm72_vm2, %v71_v39, -inf }
 0x2a1   :  { %74 = vmax.xlane.f32.xlu1 %v73_v40 }
 0x32e   :  { %v75_v41 = vpop.xlane.xlu1 %74 }
 0x32f   :  { %v76_v42 = vrot.slane %v75_v41, 4 }
 0x331   :  { %v77_v43 = vmax.f32 %v75_v41, %v76_v42 }
 0x333   :  { %v78_v44 = vrot.slane %v77_v43, 2 }
 0x335   :  { %v79_v45 = vmax.f32 %v77_v43, %v78_v44 }
 0x337   :  { %v80_v46 = vrot.slane %v79_v45, 1 }
 0x339   :  { %v81_v47 = vmax.f32 %v79_v45, %v80_v46 }
 0x33b   :  { %195 = vpush %v81_v47 }
 0x36c   :  { %s196_s1 = spop %195 }
 0x36d   :  { %v83_v50 = vstv %s196_s1 }
 0x36e   :  { %v84_v52 = vsel %vm304_vm3, %v83_v50, %v68_v36 }
 0x36f   :  { %v85_v53 = vmul.f32 %v84_v52, %v65_v32 }
 0x371   :  { %v90_v54 = vrot.slane %v85_v53, %v311_v51 }
 0x373   :  { %v92_v55 = vmul.f32 %v204_v13, %v90_v54 }
 0x375   :  { %v93_v56 = vsel %vm26_vm0, %v92_v55, 0.0 }
 0x376   :  { %94 = vadd.xlane.f32.xlu0 %v93_v56 }
 0x403   :  { %v95_v57 = vpop.xlane.xlu0 %94 }
 0x404   :  { %209 = vrcp.f32 %v95_v57 }
 0x40e   :  { %v210_v58 = vpop.eup %209 }
 0x40f   :  { %v97_v59 = vmul.f32 0.125, %v210_v58 }
 0x411   :  { %v98_v60 = vmul.f32 %v97_v59, %v92_v55 }
 0x413   :  { %v99_v61 = vsel %vm26_vm0, %v98_v60, 0.0 }
 0x414   :  { %v100_v62 = vrot.slane %v99_v61, 4 }
 0x416   :  { %v101_v63 = vadd.f32 %v100_v62, %v99_v61 }
 0x418   :  { %v102_v0 = vrot.slane %v101_v63, 2 }
 0x41a   :  { %v103_v1 = vadd.f32 %v102_v0, %v101_v63 }
 0x41c   :  { %v104_v2 = vrot.slane %v103_v1, 1 }
 0x41e   :  { %v105_v3 = vadd.f32 %v104_v2, %v103_v1 }
 0x420   :  { %211 = vrcp.f32 %v105_v3 }
 0x42a   :  { %v212_v4 = vpop.eup %211 }
 0x42b   :  { %v107_v5 = vmul.f32 %v212_v4, %v301_v34 }
 0x42d   :  { %v108_v6 = vand.u32 2147483647, %v107_v5 }
 0x42f   :  { %vm109_vm4 = vcmp.eq.f32.partialorder %v108_v6, inf }
 0x430   :  { %v110_v7 = vsel %vm109_vm4, 0.0, %v107_v5 }
 0x431   :  { %v111_v8 = vsel %vm72_vm2, %v110_v7, -inf }
 0x432   :  { %112 = vmax.xlane.f32.xlu1 %v111_v8 }
 0x4bf   :  { %v113_v9 = vpop.xlane.xlu1 %112 }
 0x4c0   :  { %v114_v10 = vrot.slane %v113_v9, 4 }
 0x4c2   :  { %v115_v11 = vmax.f32 %v113_v9, %v114_v10 }
 0x4c4   :  { %v116_v12 = vrot.slane %v115_v11, 2 }
 0x4c6   :  { %v117_v13 = vmax.f32 %v115_v11, %v116_v12 }
 0x4c8   :  { %v118_v14 = vrot.slane %v117_v13, 1 }
 0x4ca   :  { %v119_v15 = vmax.f32 %v117_v13, %v118_v14 }
 0x4cc   :  { %197 = vpush %v119_v15 }
 0x4fd   :  { %s198_s25 = spop %197 }
 0x4fe   :  { %v121_v16 = vstv %s198_s25 }
 0x4ff   :  { %v122_v17 = vsel %vm109_vm4, %v121_v16, %v107_v5 }
 0x500   :  { %v127_v18 = vrot.slane %v122_v17, %v311_v51 }
 0x502   :  { %v129_v19 = vmul.f32 %v127_v18, %v98_v60 }
 0x504   :  { %v130_v20 = vsel %vm26_vm0, %v129_v19, 0.0 }
 0x505   :  { %131 = vadd.xlane.f32.xlu0 %v130_v20 }
 0x592   :  { %v132_v21 = vpop.xlane.xlu0 %131 }
 0x593   :  { %213 = vrcp.f32 %v132_v21 }
 0x59d   :  { %v214_v22 = vpop.eup %213 }
 0x59e   :  { %v134_v23 = vmul.f32 0.125, %v214_v22 }
 0x5a0   :  { %v135_v24 = vmul.f32 %v134_v23, %v129_v19 }
 0x5a2   :  { %v136_v25 = vsel %vm26_vm0, %v135_v24, 0.0 }
 0x5a3   :  { %v137_v26 = vrot.slane %v136_v25, 4 }
 0x5a5   :  { %v138_v27 = vadd.f32 %v137_v26, %v136_v25 }
 0x5a7   :  { %v139_v28 = vrot.slane %v138_v27, 2 }
 0x5a9   :  { %v140_v29 = vadd.f32 %v139_v28, %v138_v27 }
 0x5ab   :  { %v141_v30 = vrot.slane %v140_v29, 1 }
 0x5ad   :  { %v142_v31 = vadd.f32 %v141_v30, %v140_v29 }
 0x5af   :  { %215 = vrcp.f32 %v142_v31 }
 0x5b9   :  { %v216_v32 = vpop.eup %215 }
 0x5ba   :  { %v144_v33 = vmul.f32 %v216_v32, %v301_v34 }
 0x5bc   :  { %v145_v35 = vand.u32 2147483647, %v144_v33 }
 0x5be   :  { %vm146_vm5 = vcmp.eq.f32.partialorder %v145_v35, inf }
 0x5bf   :  { %v147_v36 = vsel %vm146_vm5, 0.0, %v144_v33 }
 0x5c0   :  { %v148_v37 = vsel %vm72_vm2, %v147_v36, -inf }
 0x5c1   :  { %149 = vmax.xlane.f32.xlu1 %v148_v37 }
 0x64e   :  { %v150_v38 = vpop.xlane.xlu1 %149 }
 0x64f   :  { %v151_v39 = vrot.slane %v150_v38, 4 }
 0x651   :  { %v152_v40 = vmax.f32 %v150_v38, %v151_v39 }
 0x653   :  { %v153_v41 = vrot.slane %v152_v40, 2 }
 0x655   :  { %v154_v42 = vmax.f32 %v152_v40, %v153_v41 }
 0x657   :  { %v155_v43 = vrot.slane %v154_v42, 1 }
 0x659   :  { %v156_v44 = vmax.f32 %v154_v42, %v155_v43 }
 0x65b   :  { %199 = vpush %v156_v44 }
 0x68c   :  { %s200_s26 = spop %199 }
 0x68d   :  { %v158_v45 = vstv %s200_s26 }
 0x68e   :  { %v159_v46 = vsel %vm146_vm5, %v158_v45, %v144_v33 }
 0x68f   :  { %v164_v47 = vrot.slane %v159_v46, %v311_v51 }
 0x691   :  { %v166_v34 = vmul.f32 %v164_v47, %v135_v24 }
 0x693   :  { %v167_v48 = vsel %vm26_vm0, %v166_v34, 0.0 }
 0x694   :  { %168 = vadd.xlane.f32.xlu0 %v167_v48 }
 0x721   :  { %v169_v49 = vpop.xlane.xlu0 %168 }
 0x722   :  { %217 = vrcp.f32 %v169_v49 }
 0x72c   :  { %v218_v50 = vpop.eup %217 }
 0x72d   :  { %v172_v52 = vmul.f32 %v218_v50, %v166_v34 }
 0x72f   :  { %173 = vst.msk [vmem:[#allocation5] sm:$0xff] %vm26_vm0, %v172_v52 }
 0x730   :  { %252 = shalt.err (!%p249_p12)
}
 0x731   :  { %s253_s4 = scalar_lea.hbm %s342_s2, 128 }
 0x732   :  { %p254_p13 = scmp.ne.s32.totalorder %s342_s2, %s253_s4  ;;  %p257_p0 = scmp.lt.u32.totalorder %s253_s4, %s342_s2 }
 0x734   :  { %p259_p1 = pnand %p257_p0, %p254_p13 }
 0x736   :  { %262 = shalt.err (!%p259_p1)
}
 0x737   :  { %183 = dma.vmem_to_hbm [thread:$0]  %s181_s28, 128, %s342_s2, [#allocation4]  }
 0x738   :  { %265 = dma.done.wait [#allocation4], 128  }
 0x739   :  { %266 = vsyncadd [#allocation4], 4294967168 }
 0x73a   :  { %187 = vsyncpa [#allocation3], 1 }
 0x73b   :  { %188 = vsyncpa [#allocation4], 1 }

</bundles_post_ra>
